<compile_context>
chip_gen: v6e
topology: v6e:2x2x1
jax: 0.10.0
libtpu: 0.0.40
codegen_flags: <defaults>
</compile_context>

<pallas_src>
import jax
import jax.numpy as jnp
from jax.experimental import pallas as pl
from jax.experimental.pallas import tpu as pltpu

EPS = 1e-5
LANES = 128


def _round_up(x, m):
    return pl.cdiv(x, m) * m


# ----------------------------- Pallas kernels -------------------------------

def _conv_stats_kernel(p_ref, w_ref, o_ref, s_ref):
    """Conv-as-matmul tile + fused per-tile BatchNorm partial statistics.

    p_ref: (tm, K)     im2col patches (bf16)     w_ref: (K, OCP)   weights (bf16)
    o_ref: (tm, OCP)   conv output (f32)         s_ref: (1, 8, OCP) partial stats (f32)
    s_ref row 0 = per-channel sum, row 1 = per-channel sum of squares,
    rows 2..7 are padding kept only for (8,128) tile alignment.
    No bias add: a per-channel constant before training-mode BN cancels in (y - mean).
    """
    acc = jnp.dot(p_ref[...], w_ref[...], preferred_element_type=jnp.float32)
    o_ref[...] = acc
    s_ref[0, 0:1, :] = jnp.sum(acc, axis=0, keepdims=True)
    s_ref[0, 1:2, :] = jnp.sum(acc * acc, axis=0, keepdims=True)
    s_ref[0, 2:8, :] = jnp.zeros((6, acc.shape[1]), jnp.float32)


def _bn_relu_kernel(y_ref, scale_ref, shift_ref, o_ref):
    """Streaming normalize + affine + ReLU: out = max(y * scale + shift, 0).

    All math in f32 (v5e has no bf16 VPU/EUP); scale/shift are precomputed per-channel
    from the batch statistics, so this pass is a pure HBM-roofline stream.
    """
    o_ref[...] = jnp.maximum(y_ref[...] * scale_ref[...] + shift_ref[...], 0.0)


# ------------------------------- glue (JAX) ---------------------------------

def _im2col(x_nchw, kh, kw, stride, padding):
    N, C, H, W = x_nchw.shape
    xp = jnp.pad(x_nchw, ((0, 0), (0, 0), (padding, padding), (padding, padding)))
    OH = (H + 2 * padding - kh) // stride + 1
    OW = (W + 2 * padding - kw) // stride + 1
    cols = []
    for i in range(kh):
        for j in range(kw):
            cols.append(xp[:, :, i:i + stride * OH:stride, j:j + stride * OW:stride])
    cols = jnp.stack(cols, axis=0)                 # (KH*KW, N, C, OH, OW)
    cols = cols.transpose(1, 3, 4, 2, 0)           # (N, OH, OW, C, KH*KW)
    patches = cols.reshape(N * OH * OW, C * kh * kw)
    return patches, OH, OW


def basic_conv_forward(x_nchw, conv_w, conv_b, bn_gamma, bn_beta,
                       *, stride, padding, tm=512, conv_dtype=jnp.bfloat16):
    """Forward of BasicConv. x_nchw: (N, C, H, W) f32; conv_w: (OC, C, KH, KW).

    conv_b is accepted for API parity with nn.Conv2d(bias=True) but is not used:
    the bias cancels exactly inside training-mode BatchNorm (y - batch_mean).
    """
    del conv_b  # cancels in training-mode BN; adding it would be pure wasted VPU/DMA.
    OC, C, KH, KW = conv_w.shape
    N = x_nchw.shape[0]
    K = C * KH * KW
    OCP = int(_round_up(OC, LANES))        # lane-dense channel dim (multiple of 128)

    patches, OH, OW = _im2col(x_nchw.astype(jnp.float32), KH, KW, stride, padding)
    M = patches.shape[0]                   # true number of output pixels

    # Row tiling: large tiles amortize the ~0.35us/step overhead; pad M with zero rows
    # instead of requiring divisibility (zero rows contribute nothing to the stats since
    # there is no bias, and are sliced away at the end).
    tm = int(max(8, min(tm, _round_up(M, 8))))
    Mp = int(_round_up(M, tm))
    nt = Mp // tm
    tn = tm // 2 if tm % 16 == 0 else tm   # normalize-pass tile: >=2 grid steps so the
    ntn = Mp // tn                         # pass pipelines and both v7x TCs get work.

    patches = jnp.pad(patches, ((0, Mp - M), (0, 0))).astype(conv_dtype)
    w2d = conv_w.reshape(OC, K).T.astype(jnp.float32)                 # (K, OC)
    w2d = jnp.pad(w2d, ((0, 0), (0, OCP - OC))).astype(conv_dtype)    # (K, OCP)

    # --- pass 1: conv as lane-dense tiled matmul, fused BN partial statistics ---
    conv_out, part = pl.pallas_call(
        _conv_stats_kernel,
        out_shape=(jax.ShapeDtypeStruct((Mp, OCP), jnp.float32),
                   jax.ShapeDtypeStruct((nt, 8, OCP), jnp.float32)),
        grid_spec=pltpu.PrefetchScalarGridSpec(
            num_scalar_prefetch=0,
            grid=(nt,),
            in_specs=[
                pl.BlockSpec((tm, K), lambda i: (i, 0)),
                pl.BlockSpec((K, OCP), lambda i: (0, 0)),
            ],
            out_specs=[
                pl.BlockSpec((tm, OCP), lambda i: (i, 0)),
                pl.BlockSpec((1, 8, OCP), lambda i: (i, 0, 0)),
            ],
        ),
        compiler_params=pltpu.CompilerParams(
            dimension_semantics=("parallel",)),
    )(patches, w2d)

    # --- tiny per-channel reduction of the per-tile partials (O(nt*128), stays in XLA) ---
    ssum = jnp.sum(part[:, 0, :], axis=0)                    # (OCP,)
    ssq = jnp.sum(part[:, 1, :], axis=0)                     # (OCP,)
    inv_m = jnp.float32(1.0 / M)                             # true M (zero-pad rows are 0)
    mean = ssum * inv_m
    var = jnp.maximum(ssq * inv_m - mean * mean, 0.0)        # biased batch variance
    gamma = jnp.pad(bn_gamma.astype(jnp.float32), (0, OCP - OC))
    beta = jnp.pad(bn_beta.astype(jnp.float32), (0, OCP - OC))
    scale = gamma * jax.lax.rsqrt(var + EPS)                 # padded channels: gamma=0 -> 0
    shift = beta - mean * scale

    # --- pass 2: streaming normalize + affine + ReLU, tiled & parallel over rows ---
    bn_out = pl.pallas_call(
        _bn_relu_kernel,
        out_shape=jax.ShapeDtypeStruct((Mp, OCP), jnp.float32),
        grid_spec=pltpu.PrefetchScalarGridSpec(
            num_scalar_prefetch=0,
            grid=(ntn,),
            in_specs=[
                pl.BlockSpec((tn, OCP), lambda i: (i, 0)),
                pl.BlockSpec((1, OCP), lambda i: (0, 0)),
                pl.BlockSpec((1, OCP), lambda i: (0, 0)),
            ],
            out_specs=pl.BlockSpec((tn, OCP), lambda i: (i, 0)),
        ),
        compiler_params=pltpu.CompilerParams(
            dimension_semantics=("parallel",)),
    )(conv_out, scale.reshape(1, OCP), shift.reshape(1, OCP))

    # (Mp, OCP) -> NCHW.  A channels-last consumer could take
    # bn_out[:M, :OC].reshape(N, OH, OW, OC) directly and skip this transpose.
    out = bn_out[:M, :OC].reshape(N, OH, OW, OC).transpose(0, 3, 1, 2)
    return out


# ------------------------------ reference -----------------------------------

def _reference(x, conv_w, conv_b, gamma, beta, stride, padding, *, quantize):
    if quantize:  # mimic the kernel's bf16 MXU inputs (f32 accumulation)
        x = x.astype(jnp.bfloat16).astype(jnp.float32)
        conv_w = conv_w.astype(jnp.bfloat16).astype(jnp.float32)
    y = jax.lax.conv_general_dilated(
        x, conv_w, (stride, stride), [(padding, padding), (padding, padding)],
        dimension_numbers=("NCHW", "OIHW", "NCHW"))
    y = y + conv_b.reshape(1, -1, 1, 1)          # bias kept here; it cancels in BN below
    mean = y.mean(axis=(0, 2, 3), keepdims=True)
    var = y.var(axis=(0, 2, 3), keepdims=True)   # biased, as BN training mode uses
    y = (y - mean) * jax.lax.rsqrt(var + EPS)
    y = y * gamma.reshape(1, -1, 1, 1) + beta.reshape(1, -1, 1, 1)
    return jnp.maximum(y, 0.0)


# --------------------------------- main --------------------------------------

if __name__ == "__main__":
    # BasicConv(in_planes=4, out_planes=8, kernel_size=3, stride=1, padding=1)
    N, C, H, W = 2, 4, 16, 16
    OC, KH, KW = 8, 3, 3
    stride, padding = 1, 1

    key = jax.random.PRNGKey(0)
    k_x, k_w, k_b, k_g, k_bt = jax.random.split(key, 5)

    x = jax.random.normal(k_x, (N, C, H, W), jnp.float32)
    conv_w = jax.random.normal(k_w, (OC, C, KH, KW), jnp.float32) * 0.1
    conv_b = jax.random.normal(k_b, (OC,), jnp.float32) * 0.1
    bn_gamma = 1.0 + 0.1 * jax.random.normal(k_g, (OC,), jnp.float32)
    bn_beta = 0.1 * jax.random.normal(k_bt, (OC,), jnp.float32)

    out = basic_conv_forward(x, conv_w, conv_b, bn_gamma, bn_beta,
                             stride=stride, padding=padding)
    out = jax.block_until_ready(out)
    assert out.shape == (N, OC, H, W), out.shape

    # Tight check vs a reference with the same bf16-quantized conv operands
    # (validates the kernel math; also validates that dropping the bias is exact).
    ref_q = _reference(x, conv_w, conv_b, bn_gamma, bn_beta, stride, padding, quantize=True)
    assert jnp.allclose(out, ref_q, atol=1e-3, rtol=1e-3), float(jnp.abs(out - ref_q).max())

    # Loose check vs the full-f32 module semantics (bf16 MXU streams stay close).
    ref_f = _reference(x, conv_w, conv_b, bn_gamma, bn_beta, stride, padding, quantize=False)
    assert jnp.allclose(out, ref_f, atol=5e-2, rtol=5e-2), float(jnp.abs(out - ref_f).max())

    print("KERNEL_OK")
</pallas_src>

<mosaic_0001>
module attributes {stable_mosaic.version = 11 : i64} {
  func.func @_conv_stats_kernel(%arg0: i32, %arg1: memref<512x36xbf16, #tpu.memory_space<vmem>>, %arg2: memref<36x128xbf16, #tpu.memory_space<vmem>>, %arg3: memref<512x128xf32, #tpu.memory_space<vmem>>, %arg4: memref<1x8x128xf32, #tpu.memory_space<vmem>>) attributes {dimension_semantics = [#tpu.dimension_semantics<parallel>], iteration_bounds = array<i64: 1>, scalar_prefetch = 0 : i64, scratch_operands = 0 : i64, tpu.core_type = #tpu.core_type<tc>, window_params = [{transform_indices = @transform_0, window_bounds = array<i64: 512, 36>}, {pipeline_mode = #tpu.pipeline_mode<synchronous>, transform_indices = @transform_1, window_bounds = array<i64: 36, 128>}, {transform_indices = @transform_2, window_bounds = array<i64: 512, 128>}, {transform_indices = @transform_3, window_bounds = array<i64: 1, 8, 128>}]} {
    %c0 = arith.constant 0 : index
    %c0_0 = arith.constant 0 : index
    %0 = vector.load %arg1[%c0, %c0_0] : memref<512x36xbf16, #tpu.memory_space<vmem>>, vector<512x36xbf16>
    %c0_1 = arith.constant 0 : index
    %c0_2 = arith.constant 0 : index
    %1 = vector.load %arg2[%c0_1, %c0_2] : memref<36x128xbf16, #tpu.memory_space<vmem>>, vector<36x128xbf16>
    %cst = arith.constant dense<0.000000e+00> : vector<512x128xf32>
    %2 = tpu.matmul %0, %1, %cst {dimension_numbers = #tpu.dot_dimension_numbers<[1], [0], [0], [1], [0, 0, 1, 1], [], []>} : vector<512x36xbf16>, vector<36x128xbf16>, vector<512x128xf32> -> vector<512x128xf32>
    %c0_3 = arith.constant 0 : index
    %c0_4 = arith.constant 0 : index
    %3 = vector.load %arg3[%c0_3, %c0_4] : memref<512x128xf32, #tpu.memory_space<vmem>>, vector<512x128xf32>
    tpu.vector_store %arg3[%c0_3, %c0_4], %2 {strides = array<i32>} : memref<512x128xf32, #tpu.memory_space<vmem>>, vector<512x128xf32>,
    %cst_5 = arith.constant dense<0.000000e+00> : vector<128xf32>
    %4 = vector.multi_reduction <add>, %2, %cst_5 [0] : vector<512x128xf32> to vector<128xf32>
    %5 = vector.shape_cast %4 : vector<128xf32> to vector<1x128xf32>
    %c0_6 = arith.constant 0 : index
    %c0_7 = arith.constant 0 : index
    %c0_8 = arith.constant 0 : index
    %6 = vector.load %arg4[%c0_6, %c0_7, %c0_8] : memref<1x8x128xf32, #tpu.memory_space<vmem>>, vector<1x1x128xf32>
    %7 = vector.shape_cast %6 : vector<1x1x128xf32> to vector<1x128xf32>
    %8 = vector.shape_cast %5 : vector<1x128xf32> to vector<1x1x128xf32>
    tpu.vector_store %arg4[%c0_6, %c0_7, %c0_8], %8 {strides = array<i32>} : memref<1x8x128xf32, #tpu.memory_space<vmem>>, vector<1x1x128xf32>,
    %9 = arith.mulf %2, %2 : vector<512x128xf32>
    %cst_9 = arith.constant dense<0.000000e+00> : vector<128xf32>
    %10 = vector.multi_reduction <add>, %9, %cst_9 [0] : vector<512x128xf32> to vector<128xf32>
    %11 = vector.shape_cast %10 : vector<128xf32> to vector<1x128xf32>
    %c0_10 = arith.constant 0 : index
    %c1 = arith.constant 1 : index
    %c0_11 = arith.constant 0 : index
    %12 = vector.load %arg4[%c0_10, %c1, %c0_11] : memref<1x8x128xf32, #tpu.memory_space<vmem>>, vector<1x1x128xf32>
    %13 = vector.shape_cast %12 : vector<1x1x128xf32> to vector<1x128xf32>
    %14 = vector.shape_cast %11 : vector<1x128xf32> to vector<1x1x128xf32>
    tpu.vector_store %arg4[%c0_10, %c1, %c0_11], %14 {strides = array<i32>} : memref<1x8x128xf32, #tpu.memory_space<vmem>>, vector<1x1x128xf32>,
    %cst_12 = arith.constant 0.000000e+00 : f32
    %15 = vector.broadcast %cst_12 : f32 to vector<6x128xf32>
    %c0_13 = arith.constant 0 : index
    %c2 = arith.constant 2 : index
    %c0_14 = arith.constant 0 : index
    %16 = vector.load %arg4[%c0_13, %c2, %c0_14] : memref<1x8x128xf32, #tpu.memory_space<vmem>>, vector<1x6x128xf32>
    %17 = vector.shape_cast %16 : vector<1x6x128xf32> to vector<6x128xf32>
    %18 = vector.shape_cast %15 : vector<6x128xf32> to vector<1x6x128xf32>
    tpu.vector_store %arg4[%c0_13, %c2, %c0_14], %18 {strides = array<i32>} : memref<1x8x128xf32, #tpu.memory_space<vmem>>, vector<1x6x128xf32>,
    return
  }
  func.func @transform_0(%arg0: i32) -> (i32, i32) {
    %c0_i32 = arith.constant 0 : i32
    %c0_i32_0 = arith.constant 0 : i32
    return %arg0, %c0_i32 : i32, i32
  }
  func.func @transform_1(%arg0: i32) -> (i32, i32) {
    %c0_i32 = arith.constant 0 : i32
    %c0_i32_0 = arith.constant 0 : i32
    %c0_i32_1 = arith.constant 0 : i32
    return %c0_i32, %c0_i32_0 : i32, i32
  }
  func.func @transform_2(%arg0: i32) -> (i32, i32) {
    %c0_i32 = arith.constant 0 : i32
    %c0_i32_0 = arith.constant 0 : i32
    return %arg0, %c0_i32 : i32, i32
  }
  func.func @transform_3(%arg0: i32) -> (i32, i32, i32) {
    %c0_i32 = arith.constant 0 : i32
    %c0_i32_0 = arith.constant 0 : i32
    %c0_i32_1 = arith.constant 0 : i32
    return %arg0, %c0_i32, %c0_i32_0 : i32, i32, i32
  }
}

</mosaic_0001>

<bundles_post_ra>
// kernel: tpu_custom_call.1
= control target key start
LH: loop header
LB: loop body
LE: loop exit
PB: predicated region body
PF: predicated region fallthrough
CT: control target
= control target key end

     0   :  { %9 = vsyncpa [#allocation3], 0  ;;  %vm357_vm0 = vcmask 1041408   ;;  %vm260_vm1 = vcmask 293888   ;;  %s1573_s0 = inlined_call_operand.vmem [shape: bf16[512,36], index: 0, kind: input, shape index: {}]   ;;  %s1574_s1 = inlined_call_operand.vmem [shape: bf16[36,128], index: 1, kind: input, shape index: {}]   ;;  %s1575_s2 = inlined_call_operand.hbm [shape: f32[512,128], index: 2, kind: output, shape index: {0}]   ;;  %s1576_s3 = inlined_call_operand.hbm [shape: f32[1,8,128], index: 3, kind: output, shape index: {1}]  }
   0x1   :  { %v1134_v0 = vld [vmem:[%s1574_s1 + $0x10] ss:$0 sps:$4 sm:$0x33]   ;;  %v1135_v1 = vld [vmem:[%s1574_s1 + $0x8] sm:$0xff]   ;;  %v1137_v3 = vld [vmem:[%s1573_s0] sm:$0xff]  }
   0x2   :  { %1127 = vmatprep.subr.msk.bf16.mxu0 %vm357_vm0, %v1134_v0  ;;  %v359_v2 = vsel %vm357_vm0, %v1134_v0, 0  ;;  %1128 = vmatprep.subr.msk.bf16.mxu1 %vm357_vm0, %v1134_v0  ;;  %v1136_v4 = vld [vmem:[%s1574_s1] sm:$0xff]   ;;  %v1138_v5 = vld [vmem:[%s1573_s0 + $0x8] sm:$0xff]   ;;  %v1139_v6 = vld [vmem:[%s1573_s0 + $0x10] sm:$0xff]  }
   0x3   :  { %1052 = vmatpush3.bf16.msra.mxu0 %v359_v2  ;;  %1124 = vmatpush3.bf16.msra.mxu1 %v359_v2  ;;  %v1140_v7 = vld [vmem:[%s1573_s0 + $0x18] sm:$0xff]   ;;  %v1141_v8 = vld [vmem:[%s1573_s0 + $0x20] sm:$0xff]   ;;  %v1154_v10 = vld [vmem:[%s1573_s0 + $0x88] sm:$0xff]  }
   0x4   :  { %1053 = vmatprep.subr.bf16.mxu0 %v1135_v1  ;;  %1122 = vmatprep.subr.bf16.mxu1 %v1135_v1  ;;  %v1153_v9 = vld [vmem:[%s1573_s0 + $0x80] sm:$0xff]   ;;  %v1155_v11 = vld [vmem:[%s1573_s0 + $0x90] sm:$0xff]   ;;  %v1142_v12 = vld [vmem:[%s1573_s0 + $0x28] sm:$0xff]  }
   0x5   :  { %1057 = vmatprep.mubr.msk.bf16.mxu0 %vm260_vm1, %v1137_v3  ;;  %1089 = vmatprep.mubr.msk.bf16.mxu1 %vm260_vm1, %v1153_v9  ;;  %v1143_v13 = vld [vmem:[%s1573_s0 + $0x30] sm:$0xff]   ;;  %v1156_v14 = vld [vmem:[%s1573_s0 + $0x98] sm:$0xff]   ;;  %v1157_v15 = vld [vmem:[%s1573_s0 + $0xa0] sm:$0xff]  }
   0x6   :  { %v1144_v16 = vld [vmem:[%s1573_s0 + $0x38] sm:$0xff]   ;;  %v1158_v17 = vld [vmem:[%s1573_s0 + $0xa8] sm:$0xff]   ;;  %v1145_v18 = vld [vmem:[%s1573_s0 + $0x40] sm:$0xff]  }
   0x7   :  { %1054 = vmatpush3.bf16.msra.mxu0 %v1135_v1  ;;  %1125 = vmatpush3.bf16.msra.mxu1 %v1135_v1  ;;  %v1159_v19 = vld [vmem:[%s1573_s0 + $0xb0] sm:$0xff]  }
   0x8   :  { %1055 = vmatprep.subr.bf16.mxu0 %v1136_v4  ;;  %1123 = vmatprep.subr.bf16.mxu1 %v1136_v4 }
   0xb   :  { %1056 = vmatpush3.bf16.msra.mxu0 %v1136_v4  ;;  %1126 = vmatpush3.bf16.msra.mxu1 %v1136_v4 }
   0xe   :  { %1058 = vmatmul.mubr.msk.bf16.vlgmr.msra.gmra.mxu0 %vm260_vm1, %v1138_v5  ;;  %1090 = vmatmul.mubr.msk.bf16.vlgmr.msra.gmra.mxu1 %vm260_vm1, %v1154_v10 }
   0xf   :  { %1061 = vmatprep.mubr.msk.bf16.mxu0 %vm260_vm1, %v1139_v6  ;;  %1093 = vmatprep.mubr.msk.bf16.mxu1 %vm260_vm1, %v1155_v11 }
  0x16   :  { %1062 = vmatmul.mubr.msk.bf16.gmra.mxu0 %vm260_vm1, %v1140_v7  ;;  %1094 = vmatmul.mubr.msk.bf16.gmra.mxu1 %vm260_vm1, %v1156_v14 }
  0x17   :  { %1065 = vmatprep.mubr.msk.bf16.mxu0 %vm260_vm1, %v1141_v8  ;;  %1097 = vmatprep.mubr.msk.bf16.mxu1 %vm260_vm1, %v1157_v15 }
  0x1e   :  { %1066 = vmatmul.mubr.msk.bf16.gmra.mxu0 %vm260_vm1, %v1142_v12 }
  0x1f   :  { %1069 = vmatprep.mubr.msk.bf16.mxu0 %vm260_vm1, %v1143_v13 }
  0x20   :  { %10 = vsyncpa [#allocation5], 0  ;;  %1098 = vmatmul.mubr.msk.bf16.gmra.mxu1 %vm260_vm1, %v1158_v17  ;;  %v1146_v20 = vld [vmem:[%s1573_s0 + $0x48] sm:$0xff]   ;;  %v1160_v21 = vld [vmem:[%s1573_s0 + $0xb8] sm:$0xff]   ;;  %v1213_v9 = vmov 0.0  }
  0x21   :  { %1101 = vmatprep.mubr.msk.bf16.mxu1 %vm260_vm1, %v1159_v19  ;;  %v1147_v22 = vld [vmem:[%s1573_s0 + $0x50] sm:$0xff]   ;;  %v1161_v23 = vld [vmem:[%s1573_s0 + $0xc0] sm:$0xff]   ;;  %v1148_v24 = vld [vmem:[%s1573_s0 + $0x58] sm:$0xff]   ;;  %918 = vst [vmem:[#allocation4 + $0x2] sm:$0x3f] %v1213_v9 }
  0x22   :  { %v1162_v25 = vld [vmem:[%s1573_s0 + $0xc8] sm:$0xff]   ;;  %v1149_v26 = vld [vmem:[%s1573_s0 + $0x60] sm:$0xff]   ;;  %v1163_v27 = vld [vmem:[%s1573_s0 + $0xd0] sm:$0xff]  }
  0x23   :  { %v1150_v28 = vld [vmem:[%s1573_s0 + $0x68] sm:$0xff]   ;;  %v1164_v29 = vld [vmem:[%s1573_s0 + $0xd8] sm:$0xff]   ;;  %v1151_v30 = vld [vmem:[%s1573_s0 + $0x70] sm:$0xff]  }
  0x24   :  { %v1165_v31 = vld [vmem:[%s1573_s0 + $0xe0] sm:$0xff]   ;;  %v1152_v32 = vld [vmem:[%s1573_s0 + $0x78] sm:$0xff]   ;;  %v1166_v33 = vld [vmem:[%s1573_s0 + $0xe8] sm:$0xff]  }
  0x25   :  { %v1167_v34 = vld [vmem:[%s1573_s0 + $0xf0] sm:$0xff]   ;;  %v1168_v35 = vld [vmem:[%s1573_s0 + $0xf8] sm:$0xff]   ;;  %s1214_s0 = smov [#allocation2]  }
  0x26   :  { %1070 = vmatmul.mubr.msk.bf16.gmra.mxu0 %vm260_vm1, %v1144_v16  ;;  %s924_s25 = sshll.u32 %s1214_s0, 4  ;;  %s925_s25 = int_to_ptr.vmem [resolvable:$true] %s924_s25 }
  0x27   :  { %1073 = vmatprep.mubr.msk.bf16.mxu0 %vm260_vm1, %v1145_v18  ;;  %s1169_s26 = scalar_lea.vmem %s925_s25, 8192  ;;  %p1174_p1 = scmp.lt.s32.totalorder %s925_s25, %s925_s25 }
  0x28   :  { %1102 = vmatmul.mubr.msk.bf16.gmra.mxu1 %vm260_vm1, %v1160_v21  ;;  %p1170_p0 = scmp.ne.s32.totalorder %s925_s25, %s1169_s26  ;;  %p1175_p2 = scmp.lt.s32.totalorder %s1169_s26, %s1169_s26 }
  0x29   :  { %1105 = vmatprep.mubr.msk.bf16.mxu1 %vm260_vm1, %v1161_v23 }
  0x2a   :  { %p1176_p3 = por %p1175_p2, %p1174_p1 }
  0x2c   :  { %p1177_p4 = pnand %p1176_p3, %p1170_p0 }
  0x2e   :  { %1074 = vmatmul.mubr.msk.bf16.gmra.mxu0 %vm260_vm1, %v1146_v20 }
  0x2f   :  { %1077 = vmatprep.mubr.msk.bf16.mxu0 %vm260_vm1, %v1147_v22 }
  0x30   :  { %1106 = vmatmul.mubr.msk.bf16.gmra.mxu1 %vm260_vm1, %v1162_v25 }
  0x31   :  { %1109 = vmatprep.mubr.msk.bf16.mxu1 %vm260_vm1, %v1163_v27 }
  0x36   :  { %1078 = vmatmul.mubr.msk.bf16.gmra.mxu0 %vm260_vm1, %v1148_v24 }
  0x37   :  { %1081 = vmatprep.mubr.msk.bf16.mxu0 %vm260_vm1, %v1149_v26 }
  0x38   :  { %1110 = vmatmul.mubr.msk.bf16.gmra.mxu1 %vm260_vm1, %v1164_v29 }
  0x39   :  { %1113 = vmatprep.mubr.msk.bf16.mxu1 %vm260_vm1, %v1165_v31 }
  0x3e   :  { %1082 = vmatmul.mubr.msk.bf16.gmra.mxu0 %vm260_vm1, %v1150_v28 }
  0x3f   :  { %1085 = vmatprep.mubr.msk.bf16.mxu0 %vm260_vm1, %v1151_v30 }
  0x40   :  { %1114 = vmatmul.mubr.msk.bf16.gmra.mxu1 %vm260_vm1, %v1166_v33 }
  0x41   :  { %1117 = vmatprep.mubr.msk.bf16.mxu1 %vm260_vm1, %v1167_v34 }
  0x46   :  { %1086 = vmatmul.mubr.msk.bf16.gmra.mxu0 %vm260_vm1, %v1152_v32 }
  0x48   :  { %1118 = vmatmul.mubr.msk.bf16.gmra.mxu1 %vm260_vm1, %v1168_v35 }
  0xce   :  { %v1059_v36 = vpop.f32.mrf.mxu0  ;;  %v1375_v44 = vpop.f32.mrf.mxu1 }
  0xcf   :  { %652 = vst [vmem:[#allocation2 + $0x10] sm:$0xff] %v1059_v36  ;;  %v786_v45 = vmul.f32 %v1059_v36, %v1059_v36  ;;  %684 = vst [vmem:[#allocation2 + $0x110] sm:$0xff] %v1375_v44 }
  0xd0   :  { %v395_v37 = vpop.f32.mrf.mxu0  ;;  %v1378_v49 = vpop.f32.mrf.mxu1 }
  0xd1   :  { %650 = vst [vmem:[#allocation2] sm:$0xff] %v395_v37  ;;  %v784_v40 = vmul.f32 %v395_v37, %v395_v37  ;;  %682 = vst [vmem:[#allocation2 + $0x100] sm:$0xff] %v1378_v49 }
  0xd2   :  { %v1060_v38 = vpop.f32.mrf.mxu0  ;;  %v1381_v54 = vpop.f32.mrf.mxu1 }
  0xd3   :  { %653 = vst [vmem:[#allocation2 + $0x18] sm:$0xff] %v1060_v38  ;;  %v787_v50 = vmul.f32 %v1060_v38, %v1060_v38  ;;  %685 = vst [vmem:[#allocation2 + $0x118] sm:$0xff] %v1381_v54 }
  0xd4   :  { %v398_v39 = vpop.f32.mrf.mxu0  ;;  %v1384_v59 = vpop.f32.mrf.mxu1 }
  0xd5   :  { %651 = vst [vmem:[#allocation2 + $0x8] sm:$0xff] %v398_v39  ;;  %v714_v41 = vadd.f32 %v398_v39, %v395_v37  ;;  %v785_v42 = vmul.f32 %v398_v39, %v398_v39  ;;  %683 = vst [vmem:[#allocation2 + $0x108] sm:$0xff] %v1384_v59 }
  0xd6   :  { %v1063_v43 = vpop.f32.mrf.mxu0  ;;  %v1387_v0 = vpop.f32.mrf.mxu1 }
  0xd7   :  { %v715_v46 = vadd.f32 %v1059_v36, %v714_v41  ;;  %v848_v47 = vadd.f32 %v785_v42, %v784_v40  ;;  %656 = vst [vmem:[#allocation2 + $0x30] sm:$0xff] %v1063_v43  ;;  %v790_v1 = vmul.f32 %v1063_v43, %v1063_v43  ;;  %688 = vst [vmem:[#allocation2 + $0x130] sm:$0xff] %v1387_v0 }
  0xd8   :  { %v411_v48 = vpop.f32.mrf.mxu0  ;;  %v1390_v5 = vpop.f32.mrf.mxu1 }
  0xd9   :  { %v849_v51 = vadd.f32 %v848_v47, %v786_v45  ;;  %654 = vst [vmem:[#allocation2 + $0x20] sm:$0xff] %v411_v48  ;;  %v716_v52 = vadd.f32 %v1060_v38, %v715_v46  ;;  %v788_v56 = vmul.f32 %v411_v48, %v411_v48  ;;  %686 = vst [vmem:[#allocation2 + $0x120] sm:$0xff] %v1390_v5 }
  0xda   :  { %v1064_v53 = vpop.f32.mrf.mxu0  ;;  %v1393_v11 = vpop.f32.mrf.mxu1 }
  0xdb   :  { %v717_v55 = vadd.f32 %v716_v52, %v411_v48  ;;  %v850_v57 = vadd.f32 %v849_v51, %v787_v50  ;;  %657 = vst [vmem:[#allocation2 + $0x38] sm:$0xff] %v1064_v53  ;;  %v791_v6 = vmul.f32 %v1064_v53, %v1064_v53  ;;  %689 = vst [vmem:[#allocation2 + $0x138] sm:$0xff] %v1393_v11 }
  0xdc   :  { %v414_v58 = vpop.f32.mrf.mxu0  ;;  %v1396_v16 = vpop.f32.mrf.mxu1 }
  0xdd   :  { %v851_v60 = vadd.f32 %v850_v57, %v788_v56  ;;  %655 = vst [vmem:[#allocation2 + $0x28] sm:$0xff] %v414_v58  ;;  %v718_v61 = vadd.f32 %v717_v55, %v414_v58  ;;  %v789_v62 = vmul.f32 %v414_v58, %v414_v58  ;;  %687 = vst [vmem:[#allocation2 + $0x128] sm:$0xff] %v1396_v16 }
  0xde   :  { %v1067_v63 = vpop.f32.mrf.mxu0 }
  0xdf   :  { %v719_v2 = vadd.f32 %v1063_v43, %v718_v61  ;;  %v852_v3 = vadd.f32 %v851_v60, %v789_v62  ;;  %660 = vst [vmem:[#allocation2 + $0x50] sm:$0xff] %v1067_v63  ;;  %v794_v22 = vmul.f32 %v1067_v63, %v1067_v63 }
  0xe0   :  { %v427_v4 = vpop.f32.mrf.mxu0  ;;  %v1399_v21 = vpop.f32.mrf.mxu1 }
  0xe1   :  { %v853_v7 = vadd.f32 %v852_v3, %v790_v1  ;;  %658 = vst [vmem:[#allocation2 + $0x40] sm:$0xff] %v427_v4  ;;  %v720_v8 = vadd.f32 %v1064_v53, %v719_v2  ;;  %v792_v13 = vmul.f32 %v427_v4, %v427_v4  ;;  %692 = vst [vmem:[#allocation2 + $0x150] sm:$0xff] %v1399_v21 }
  0xe2   :  { %v1068_v10 = vpop.f32.mrf.mxu0  ;;  %v1402_v26 = vpop.f32.mrf.mxu1 }
  0xe3   :  { %v721_v12 = vadd.f32 %v720_v8, %v427_v4  ;;  %v854_v14 = vadd.f32 %v853_v7, %v791_v6  ;;  %661 = vst [vmem:[#allocation2 + $0x58] sm:$0xff] %v1068_v10  ;;  %v795_v27 = vmul.f32 %v1068_v10, %v1068_v10  ;;  %690 = vst [vmem:[#allocation2 + $0x140] sm:$0xff] %v1402_v26 }
  0xe4   :  { %v430_v15 = vpop.f32.mrf.mxu0  ;;  %v1405_v31 = vpop.f32.mrf.mxu1 }
  0xe5   :  { %v855_v17 = vadd.f32 %v854_v14, %v792_v13  ;;  %659 = vst [vmem:[#allocation2 + $0x48] sm:$0xff] %v430_v15  ;;  %v722_v18 = vadd.f32 %v721_v12, %v430_v15  ;;  %v793_v19 = vmul.f32 %v430_v15, %v430_v15  ;;  %693 = vst [vmem:[#allocation2 + $0x158] sm:$0xff] %v1405_v31 }
  0xe6   :  { %v1071_v20 = vpop.f32.mrf.mxu0  ;;  %v1408_v36 = vpop.f32.mrf.mxu1 }
  0xe7   :  { %v723_v23 = vadd.f32 %v1067_v63, %v722_v18  ;;  %v856_v24 = vadd.f32 %v855_v17, %v793_v19  ;;  %664 = vst [vmem:[#allocation2 + $0x70] sm:$0xff] %v1071_v20  ;;  %691 = vst [vmem:[#allocation2 + $0x148] sm:$0xff] %v1408_v36  ;;  %v798_v42 = vmul.f32 %v1071_v20, %v1071_v20 }
  0xe8   :  { %v443_v25 = vpop.f32.mrf.mxu0  ;;  %v1411_v41 = vpop.f32.mrf.mxu1 }
  0xe9   :  { %v857_v28 = vadd.f32 %v856_v24, %v794_v22  ;;  %662 = vst [vmem:[#allocation2 + $0x60] sm:$0xff] %v443_v25  ;;  %v724_v29 = vadd.f32 %v1068_v10, %v723_v23  ;;  %v796_v33 = vmul.f32 %v443_v25, %v443_v25  ;;  %696 = vst [vmem:[#allocation2 + $0x170] sm:$0xff] %v1411_v41 }
  0xea   :  { %v1072_v30 = vpop.f32.mrf.mxu0  ;;  %v1414_v47 = vpop.f32.mrf.mxu1 }
  0xeb   :  { %v725_v32 = vadd.f32 %v724_v29, %v443_v25  ;;  %v858_v34 = vadd.f32 %v857_v28, %v795_v27  ;;  %665 = vst [vmem:[#allocation2 + $0x78] sm:$0xff] %v1072_v30  ;;  %v799_v48 = vmul.f32 %v1072_v30, %v1072_v30  ;;  %694 = vst [vmem:[#allocation2 + $0x160] sm:$0xff] %v1414_v47 }
  0xec   :  { %v446_v35 = vpop.f32.mrf.mxu0  ;;  %v1417_v53 = vpop.f32.mrf.mxu1 }
  0xed   :  { %v859_v37 = vadd.f32 %v858_v34, %v796_v33  ;;  %663 = vst [vmem:[#allocation2 + $0x68] sm:$0xff] %v446_v35  ;;  %v726_v38 = vadd.f32 %v725_v32, %v446_v35  ;;  %v797_v39 = vmul.f32 %v446_v35, %v446_v35  ;;  %697 = vst [vmem:[#allocation2 + $0x178] sm:$0xff] %v1417_v53 }
  0xee   :  { %v1075_v40 = vpop.f32.mrf.mxu0  ;;  %v1420_v60 = vpop.f32.mrf.mxu1 }
  0xef   :  { %v727_v43 = vadd.f32 %v1071_v20, %v726_v38  ;;  %v860_v45 = vadd.f32 %v859_v37, %v797_v39  ;;  %668 = vst [vmem:[#allocation2 + $0x90] sm:$0xff] %v1075_v40  ;;  %695 = vst [vmem:[#allocation2 + $0x168] sm:$0xff] %v1420_v60  ;;  %v802_v3 = vmul.f32 %v1075_v40, %v1075_v40 }
  0xf0   :  { %v459_v46 = vpop.f32.mrf.mxu0  ;;  %v1423_v2 = vpop.f32.mrf.mxu1 }
  0xf1   :  { %v861_v50 = vadd.f32 %v860_v45, %v798_v42  ;;  %666 = vst [vmem:[#allocation2 + $0x80] sm:$0xff] %v459_v46  ;;  %v728_v51 = vadd.f32 %v1072_v30, %v727_v43  ;;  %v800_v56 = vmul.f32 %v459_v46, %v459_v46  ;;  %700 = vst [vmem:[#allocation2 + $0x190] sm:$0xff] %v1423_v2 }
  0xf2   :  { %v1076_v52 = vpop.f32.mrf.mxu0  ;;  %v1426_v8 = vpop.f32.mrf.mxu1 }
  0xf3   :  { %v729_v55 = vadd.f32 %v728_v51, %v459_v46  ;;  %v862_v57 = vadd.f32 %v861_v50, %v799_v48  ;;  %669 = vst [vmem:[#allocation2 + $0x98] sm:$0xff] %v1076_v52  ;;  %v803_v9 = vmul.f32 %v1076_v52, %v1076_v52  ;;  %698 = vst [vmem:[#allocation2 + $0x180] sm:$0xff] %v1426_v8 }
  0xf4   :  { %v462_v58 = vpop.f32.mrf.mxu0  ;;  %v1429_v14 = vpop.f32.mrf.mxu1 }
  0xf5   :  { %v863_v61 = vadd.f32 %v862_v57, %v800_v56  ;;  %667 = vst [vmem:[#allocation2 + $0x88] sm:$0xff] %v462_v58  ;;  %v730_v62 = vadd.f32 %v729_v55, %v462_v58  ;;  %v801_v63 = vmul.f32 %v462_v58, %v462_v58  ;;  %701 = vst [vmem:[#allocation2 + $0x198] sm:$0xff] %v1429_v14 }
  0xf6   :  { %v1079_v1 = vpop.f32.mrf.mxu0  ;;  %v1432_v20 = vpop.f32.mrf.mxu1 }
  0xf7   :  { %v731_v4 = vadd.f32 %v1075_v40, %v730_v62  ;;  %v864_v6 = vadd.f32 %v863_v61, %v801_v63  ;;  %672 = vst [vmem:[#allocation2 + $0xb0] sm:$0xff] %v1079_v1  ;;  %699 = vst [vmem:[#allocation2 + $0x188] sm:$0xff] %v1432_v20  ;;  %v806_v28 = vmul.f32 %v1079_v1, %v1079_v1 }
  0xf8   :  { %v475_v7 = vpop.f32.mrf.mxu0  ;;  %v1435_v27 = vpop.f32.mrf.mxu1 }
  0xf9   :  { %v865_v10 = vadd.f32 %v864_v6, %v802_v3  ;;  %670 = vst [vmem:[#allocation2 + $0xa0] sm:$0xff] %v475_v7  ;;  %v732_v12 = vadd.f32 %v1076_v52, %v731_v4  ;;  %v804_v17 = vmul.f32 %v475_v7, %v475_v7  ;;  %704 = vst [vmem:[#allocation2 + $0x1b0] sm:$0xff] %v1435_v27 }
  0xfa   :  { %v1080_v13 = vpop.f32.mrf.mxu0  ;;  %v1438_v33 = vpop.f32.mrf.mxu1 }
  0xfb   :  { %v733_v15 = vadd.f32 %v732_v12, %v475_v7  ;;  %v866_v18 = vadd.f32 %v865_v10, %v803_v9  ;;  %673 = vst [vmem:[#allocation2 + $0xb8] sm:$0xff] %v1080_v13  ;;  %v807_v34 = vmul.f32 %v1080_v13, %v1080_v13  ;;  %702 = vst [vmem:[#allocation2 + $0x1a0] sm:$0xff] %v1438_v33 }
  0xfc   :  { %v478_v19 = vpop.f32.mrf.mxu0  ;;  %v1441_v39 = vpop.f32.mrf.mxu1 }
  0xfd   :  { %v867_v22 = vadd.f32 %v866_v18, %v804_v17  ;;  %671 = vst [vmem:[#allocation2 + $0xa8] sm:$0xff] %v478_v19  ;;  %v734_v23 = vadd.f32 %v733_v15, %v478_v19  ;;  %v805_v24 = vmul.f32 %v478_v19, %v478_v19  ;;  %705 = vst [vmem:[#allocation2 + $0x1b8] sm:$0xff] %v1441_v39 }
  0xfe   :  { %v1083_v25 = vpop.f32.mrf.mxu0  ;;  %v1444_v46 = vpop.f32.mrf.mxu1 }
  0xff   :  { %v735_v29 = vadd.f32 %v1079_v1, %v734_v23  ;;  %v868_v30 = vadd.f32 %v867_v22, %v805_v24  ;;  %676 = vst [vmem:[#allocation2 + $0xd0] sm:$0xff] %v1083_v25  ;;  %703 = vst [vmem:[#allocation2 + $0x1a8] sm:$0xff] %v1444_v46  ;;  %v810_v56 = vmul.f32 %v1083_v25, %v1083_v25 }
 0x100   :  { %v491_v32 = vpop.f32.mrf.mxu0  ;;  %v1447_v55 = vpop.f32.mrf.mxu1 }
 0x101   :  { %v869_v35 = vadd.f32 %v868_v30, %v806_v28  ;;  %674 = vst [vmem:[#allocation2 + $0xc0] sm:$0xff] %v491_v32  ;;  %v736_v37 = vadd.f32 %v1080_v13, %v735_v29  ;;  %v808_v42 = vmul.f32 %v491_v32, %v491_v32  ;;  %708 = vst [vmem:[#allocation2 + $0x1d0] sm:$0xff] %v1447_v55 }
 0x102   :  { %v1084_v38 = vpop.f32.mrf.mxu0  ;;  %v1450_v62 = vpop.f32.mrf.mxu1 }
 0x103   :  { %v737_v40 = vadd.f32 %v736_v37, %v491_v32  ;;  %v870_v43 = vadd.f32 %v869_v35, %v807_v34  ;;  %677 = vst [vmem:[#allocation2 + $0xd8] sm:$0xff] %v1084_v38  ;;  %v811_v63 = vmul.f32 %v1084_v38, %v1084_v38  ;;  %706 = vst [vmem:[#allocation2 + $0x1c0] sm:$0xff] %v1450_v62 }
 0x104   :  { %v494_v45 = vpop.f32.mrf.mxu0  ;;  %v1453_v6 = vpop.f32.mrf.mxu1  ;;  %v816_v34 = vmul.f32 %v1378_v49, %v1378_v49 }
 0x105   :  { %v871_v48 = vadd.f32 %v870_v43, %v808_v42  ;;  %675 = vst [vmem:[#allocation2 + $0xc8] sm:$0xff] %v494_v45  ;;  %v738_v50 = vadd.f32 %v737_v40, %v494_v45  ;;  %v809_v51 = vmul.f32 %v494_v45, %v494_v45  ;;  %709 = vst [vmem:[#allocation2 + $0x1d8] sm:$0xff] %v1453_v6 }
 0x106   :  { %v1087_v52 = vpop.f32.mrf.mxu0  ;;  %v1456_v13 = vpop.f32.mrf.mxu1  ;;  %v817_v42 = vmul.f32 %v1384_v59, %v1384_v59 }
 0x107   :  { %v739_v57 = vadd.f32 %v1083_v25, %v738_v50  ;;  %v872_v58 = vadd.f32 %v871_v48, %v809_v51  ;;  %680 = vst [vmem:[#allocation2 + $0xf0] sm:$0xff] %v1087_v52  ;;  %707 = vst [vmem:[#allocation2 + $0x1c8] sm:$0xff] %v1456_v13  ;;  %v814_v22 = vmul.f32 %v1087_v52, %v1087_v52 }
 0x108   :  { %v507_v61 = vpop.f32.mrf.mxu0  ;;  %v1459_v19 = vpop.f32.mrf.mxu1 }
 0x109   :  { %v873_v1 = vadd.f32 %v872_v58, %v810_v56  ;;  %678 = vst [vmem:[#allocation2 + $0xe0] sm:$0xff] %v507_v61  ;;  %v740_v3 = vadd.f32 %v1084_v38, %v739_v57  ;;  %v812_v9 = vmul.f32 %v507_v61, %v507_v61  ;;  %712 = vst [vmem:[#allocation2 + $0x1f0] sm:$0xff] %v1459_v19 }
 0x10a   :  { %v1088_v4 = vpop.f32.mrf.mxu0  ;;  %v1462_v25 = vpop.f32.mrf.mxu1 }
 0x10b   :  { %v741_v7 = vadd.f32 %v740_v3, %v507_v61  ;;  %v874_v10 = vadd.f32 %v873_v1, %v811_v63  ;;  %681 = vst [vmem:[#allocation2 + $0xf8] sm:$0xff] %v1088_v4  ;;  %v815_v28 = vmul.f32 %v1088_v4, %v1088_v4  ;;  %710 = vst [vmem:[#allocation2 + $0x1e0] sm:$0xff] %v1462_v25 }
 0x10c   :  { %v510_v12 = vpop.f32.mrf.mxu0  ;;  %v1465_v32 = vpop.f32.mrf.mxu1 }
 0x10d   :  { %v875_v15 = vadd.f32 %v874_v10, %v812_v9  ;;  %679 = vst [vmem:[#allocation2 + $0xe8] sm:$0xff] %v510_v12  ;;  %v742_v17 = vadd.f32 %v741_v7, %v510_v12  ;;  %v813_v18 = vmul.f32 %v510_v12, %v510_v12  ;;  %713 = vst [vmem:[#allocation2 + $0x1f8] sm:$0xff] %v1465_v32 }
 0x10e   :  { %v1471_v38 = vpop.f32.mrf.mxu1 }
 0x10f   :  { %v743_v23 = vadd.f32 %v1087_v52, %v742_v17  ;;  %v876_v24 = vadd.f32 %v875_v15, %v813_v18  ;;  %711 = vst [vmem:[#allocation2 + $0x1e8] sm:$0xff] %v1471_v38 }
 0x111   :  { %v744_v29 = vadd.f32 %v1088_v4, %v743_v23  ;;  %v877_v30 = vadd.f32 %v876_v24, %v814_v22 }
 0x113   :  { %v878_v35 = vadd.f32 %v877_v30, %v815_v28  ;;  %v745_v37 = vadd.f32 %v744_v29, %v1378_v49 }
 0x115   :  { %v746_v40 = vadd.f32 %v745_v37, %v1384_v59  ;;  %v879_v43 = vadd.f32 %v878_v35, %v816_v34 }
 0x116   :  { %1180 = shalt.err (!%p1177_p4)
}
 0x117   :  { %s1215_s27 = smov 128   ;;  %s1216_s28 = smov 8   ;;  %v818_v49 = vmul.f32 %v1375_v44, %v1375_v44  ;;  %v747_v59 = vadd.f32 %v1375_v44, %v746_v40  ;;  %v880_v45 = vadd.f32 %v879_v43, %v817_v42  ;;  %v819_v48 = vmul.f32 %v1381_v54, %v1381_v54 }
 0x118   :  { %930 = dma.vmem_to_hbm [thread:$0]  %s925_s25, 8192, %s1575_s2, [#allocation3], %s1215_s27, %s1215_s27, %s1216_s28   ;;  %v820_v56 = vmul.f32 %v1390_v5, %v1390_v5  ;;  %v821_v63 = vmul.f32 %v1396_v16, %v1396_v16  ;;  %v822_v44 = vmul.f32 %v1387_v0, %v1387_v0  ;;  %v824_v9 = vmul.f32 %v1402_v26, %v1402_v26 }
 0x119   :  { %v881_v50 = vadd.f32 %v880_v45, %v818_v49  ;;  %v748_v51 = vadd.f32 %v1381_v54, %v747_v59  ;;  %v823_v54 = vmul.f32 %v1393_v11, %v1393_v11  ;;  %v825_v15 = vmul.f32 %v1408_v36, %v1408_v36  ;;  %s1217_s2 = smov [#allocation4]  }
 0x11a   :  { %v828_v24 = vmul.f32 %v1414_v47, %v1414_v47  ;;  %v829_v30 = vmul.f32 %v1420_v60, %v1420_v60  ;;  %v832_v42 = vmul.f32 %v1426_v8, %v1426_v8  ;;  %v833_v59 = vmul.f32 %v1432_v20, %v1432_v20  ;;  %s937_s4 = sshll.u32 %s1217_s2, 4  ;;  %s938_s4 = int_to_ptr.vmem [resolvable:$true] %s937_s4 }
 0x11b   :  { %v749_v52 = vadd.f32 %v748_v51, %v1390_v5  ;;  %v882_v57 = vadd.f32 %v881_v50, %v819_v48  ;;  %s1189_s5 = scalar_lea.vmem %s938_s4, 128  ;;  %p1194_p6 = scmp.lt.s32.totalorder %s938_s4, %s938_s4 }
 0x11c   :  { %p1190_p5 = scmp.ne.s32.totalorder %s938_s4, %s1189_s5  ;;  %p1195_p7 = scmp.lt.s32.totalorder %s1189_s5, %s1189_s5 }
 0x11d   :  { %v883_v58 = vadd.f32 %v882_v57, %v820_v56  ;;  %v750_v61 = vadd.f32 %v749_v52, %v1396_v16  ;;  %v836_v52 = vmul.f32 %v1438_v33, %v1438_v33 }
 0x11e   :  { %p1196_p8 = por %p1195_p7, %p1194_p6 }
 0x11f   :  { %v751_v1 = vadd.f32 %v1387_v0, %v750_v61  ;;  %v884_v3 = vadd.f32 %v883_v58, %v821_v63  ;;  %v826_v0 = vmul.f32 %v1399_v21, %v1399_v21  ;;  %v837_v58 = vmul.f32 %v1444_v46, %v1444_v46 }
 0x120   :  { %p1197_p9 = pnand %p1196_p8, %p1190_p5 }
 0x121   :  { %v885_v4 = vadd.f32 %v884_v3, %v822_v44  ;;  %v752_v7 = vadd.f32 %v1393_v11, %v751_v1  ;;  %v827_v11 = vmul.f32 %v1405_v31, %v1405_v31  ;;  %v840_v3 = vmul.f32 %v1450_v62, %v1450_v62 }
 0x123   :  { %v753_v5 = vadd.f32 %v752_v7, %v1402_v26  ;;  %v886_v10 = vadd.f32 %v885_v4, %v823_v54  ;;  %v841_v7 = vmul.f32 %v1456_v13, %v1456_v13 }
 0x125   :  { %v887_v12 = vadd.f32 %v886_v10, %v824_v9  ;;  %v754_v16 = vadd.f32 %v753_v5, %v1408_v36 }
 0x127   :  { %v755_v17 = vadd.f32 %v1399_v21, %v754_v16  ;;  %v888_v18 = vadd.f32 %v887_v12, %v825_v15  ;;  %v830_v21 = vmul.f32 %v1411_v41, %v1411_v41  ;;  %v844_v16 = vmul.f32 %v1462_v25, %v1462_v25 }
 0x129   :  { %v889_v22 = vadd.f32 %v888_v18, %v826_v0  ;;  %v756_v23 = vadd.f32 %v1405_v31, %v755_v17  ;;  %v831_v31 = vmul.f32 %v1417_v53, %v1417_v53  ;;  %v845_v17 = vmul.f32 %v1471_v38, %v1471_v38 }
 0x12b   :  { %v757_v26 = vadd.f32 %v756_v23, %v1414_v47  ;;  %v890_v28 = vadd.f32 %v889_v22, %v827_v11 }
 0x12d   :  { %v891_v29 = vadd.f32 %v890_v28, %v828_v24  ;;  %v758_v36 = vadd.f32 %v757_v26, %v1420_v60 }
 0x12f   :  { %v759_v34 = vadd.f32 %v1411_v41, %v758_v36  ;;  %v892_v35 = vadd.f32 %v891_v29, %v829_v30  ;;  %v834_v41 = vmul.f32 %v1423_v2, %v1423_v2 }
 0x131   :  { %v893_v37 = vadd.f32 %v892_v35, %v830_v21  ;;  %v760_v40 = vadd.f32 %v1417_v53, %v759_v34  ;;  %v835_v53 = vmul.f32 %v1429_v14, %v1429_v14 }
 0x133   :  { %v761_v47 = vadd.f32 %v760_v40, %v1426_v8  ;;  %v894_v43 = vadd.f32 %v893_v37, %v831_v31 }
 0x135   :  { %v895_v49 = vadd.f32 %v894_v43, %v832_v42  ;;  %v762_v60 = vadd.f32 %v761_v47, %v1432_v20 }
 0x137   :  { %v763_v45 = vadd.f32 %v1423_v2, %v762_v60  ;;  %v896_v48 = vadd.f32 %v895_v49, %v833_v59  ;;  %v838_v2 = vmul.f32 %v1435_v27, %v1435_v27 }
 0x139   :  { %v897_v50 = vadd.f32 %v896_v48, %v834_v41  ;;  %v764_v51 = vadd.f32 %v1429_v14, %v763_v45  ;;  %v839_v14 = vmul.f32 %v1441_v39, %v1441_v39 }
 0x13b   :  { %v765_v8 = vadd.f32 %v764_v51, %v1438_v33  ;;  %v898_v56 = vadd.f32 %v897_v50, %v835_v53 }
 0x13d   :  { %v899_v57 = vadd.f32 %v898_v56, %v836_v52  ;;  %v766_v20 = vadd.f32 %v765_v8, %v1444_v46 }
 0x13f   :  { %v767_v61 = vadd.f32 %v1435_v27, %v766_v20  ;;  %v900_v63 = vadd.f32 %v899_v57, %v837_v58  ;;  %v842_v27 = vmul.f32 %v1447_v55, %v1447_v55 }
 0x141   :  { %v901_v44 = vadd.f32 %v900_v63, %v838_v2  ;;  %v768_v1 = vadd.f32 %v1441_v39, %v767_v61  ;;  %v843_v39 = vmul.f32 %v1453_v6, %v1453_v6 }
 0x143   :  { %v769_v33 = vadd.f32 %v768_v1, %v1450_v62  ;;  %v902_v54 = vadd.f32 %v901_v44, %v839_v14 }
 0x145   :  { %v903_v4 = vadd.f32 %v902_v54, %v840_v3  ;;  %v770_v46 = vadd.f32 %v769_v33, %v1456_v13 }
 0x147   :  { %v771_v5 = vadd.f32 %v1447_v55, %v770_v46  ;;  %v904_v9 = vadd.f32 %v903_v4, %v841_v7  ;;  %v846_v55 = vmul.f32 %v1459_v19, %v1459_v19 }
 0x149   :  { %v905_v10 = vadd.f32 %v904_v9, %v842_v27  ;;  %v772_v12 = vadd.f32 %v1453_v6, %v771_v5  ;;  %v847_v6 = vmul.f32 %v1465_v32, %v1465_v32 }
 0x14b   :  { %v773_v62 = vadd.f32 %v772_v12, %v1462_v25  ;;  %v906_v15 = vadd.f32 %v905_v10, %v843_v39 }
 0x14d   :  { %v907_v0 = vadd.f32 %v906_v15, %v844_v16  ;;  %v774_v13 = vadd.f32 %v773_v62, %v1471_v38 }
 0x14f   :  { %v775_v18 = vadd.f32 %v1459_v19, %v774_v13  ;;  %v908_v11 = vadd.f32 %v907_v0, %v845_v17 }
 0x151   :  { %v776_v22 = vadd.f32 %v1465_v32, %v775_v18  ;;  %v909_v23 = vadd.f32 %v908_v11, %v846_v55 }
 0x153   :  { %v777_v25 = vrot.slane %v776_v22, 4  ;;  %v910_v26 = vadd.f32 %v909_v23, %v847_v6 }
 0x155   :  { %v778_v24 = vadd.f32 %v777_v25, %v776_v22  ;;  %v911_v28 = vrot.slane %v910_v26, 4 }
 0x157   :  { %v779_v29 = vrot.slane %v778_v24, 2  ;;  %v912_v36 = vadd.f32 %v911_v28, %v910_v26 }
 0x159   :  { %v780_v30 = vadd.f32 %v779_v29, %v778_v24  ;;  %v913_v38 = vrot.slane %v912_v36, 2 }
 0x15b   :  { %v781_v21 = vrot.slane %v780_v30, 1  ;;  %v914_v34 = vadd.f32 %v913_v38, %v912_v36 }
 0x15d   :  { %v782_v19 = vadd.f32 %v781_v21, %v780_v30  ;;  %v915_v35 = vrot.slane %v914_v34, 1 }
 0x15f   :  { %783 = vst [vmem:[#allocation4] sm:$0x1] %v782_v19  ;;  %v916_v31 = vadd.f32 %v915_v35, %v914_v34 }
 0x161   :  { %917 = vst [vmem:[#allocation4 + $0x1] sm:$0x1] %v916_v31 }
 0x162   :  { %1200 = shalt.err (!%p1197_p9)
}
 0x163   :  { %940 = dma.vmem_to_hbm [thread:$0]  %s938_s4, 128, %s1576_s3, [#allocation5]  }
 0x164   :  { %1209 = dma.done.wait [#allocation3], 8192  }
 0x165   :  { %1210 = vsyncadd [#allocation3], 4294959104 }
 0x166   :  { %1211 = dma.done.wait [#allocation5], 128  }
 0x167   :  { %1212 = vsyncadd [#allocation5], 4294967168 }
 0x168   :  { %947 = vsyncpa [#allocation3], 1 }
 0x169   :  { %948 = vsyncpa [#allocation5], 1 }

</bundles_post_ra>
